<compile_context>
chip_gen: v7x
topology: tpu7x:2x2x1
jax: 0.10.0
libtpu: 0.0.40
codegen_flags: <defaults>
</compile_context>

<pallas_src>
import jax
import jax.numpy as jnp
from jax.experimental import pallas as pl
from jax.experimental.pallas import tpu as pltpu


# ~2 MiB per VMEM buffer.  With double-buffered input + output that is at most
# 4 x 2 MiB = 8 MiB resident — comfortably inside every generation's default
# scoped-VMEM limit, while large enough to sit near the HBM roofline (~85% on
# v6e per measured data; per-grid-step overhead << DMA time).
_TARGET_BLOCK_BYTES = 2 * 1024 * 1024


def _copy_kernel(x_ref, o_ref):
    # Identical lane-dense blocks in and out -> pure unmasked VMEM copy.
    o_ref[...] = x_ref[...]


def _resolve_size(in_shape, size):
    """Replicate torch.Tensor.view() size resolution (single -1 allowed)."""
    size = tuple(int(s) for s in size)
    total = 1
    for d in in_shape:
        total *= int(d)
    if -1 in size:
        assert size.count(-1) == 1, "only one -1 allowed in view size"
        known = 1
        for s in size:
            if s != -1:
                known *= s
        assert known != 0 and total % known == 0, "invalid view size"
        size = tuple(total // known if s == -1 else s for s in size)
    out_total = 1
    for s in size:
        out_total *= s
    assert out_total == total, "view size incompatible with input numel"
    return size


def _staging_shape(numel):
    """Lane-dense 2-D staging shape (rows, L) with L % 128 == 0, else None."""
    for lanes in (1024, 512, 256, 128):
        if numel % lanes == 0:
            return numel // lanes, lanes
    return None  # caller falls back to the metadata-only reshape


def _sublane_multiple(dtype_bytes):
    # Sublane packing: (8,128) for 4-byte, (16,128) for 2-byte, (32,128) for
    # 1-byte element types.
    return max(8, 32 // max(1, dtype_bytes))


def _choose_block_rows(rows, lanes, dtype_bytes):
    """Block row count targeting ~_TARGET_BLOCK_BYTES per buffer."""
    sub = _sublane_multiple(dtype_bytes)
    br = _TARGET_BLOCK_BYTES // (lanes * dtype_bytes)
    br = max(sub, (br // sub) * sub)

    if br >= rows:
        # Whole array fits in a single target-sized block.  If it splits
        # cleanly into >=2 sublane-aligned tiles, do so, so the "parallel"
        # grid axis can shard across both v7x TensorCores (harmless on
        # single-TC v5e/v6e).
        if rows >= 2 * sub and rows % sub == 0:
            half = -(-rows // 2)                      # cdiv(rows, 2)
            half = ((half + sub - 1) // sub) * sub    # round up to sublane mult
            if half < rows:
                return half
        return rows  # full-extent block: always a legal block shape

    # br < rows: prefer a sublane-aligned divisor of rows near br so the final
    # tile isn't a masked partial store (keeps unmasked vst on the tail).
    if rows % br != 0:
        cand = br
        while cand >= sub:
            if rows % cand == 0:
                return cand
            cand -= sub
    return br


def view(x, size, *, use_pallas=False):
    """Pallas equivalent of View(size).forward(x) == x.view(size).

    Default (use_pallas=False): metadata-only jnp.reshape — the faithful,
    zero-cost equivalent of torch's contiguous .view().
    use_pallas=True: materialize the result via a tiled Pallas copy kernel.
    """
    out_shape = _resolve_size(x.shape, size)

    numel = 1
    for d in x.shape:
        numel *= int(d)

    if not use_pallas or numel == 0:
        return jnp.reshape(x, out_shape)

    staged = _staging_shape(numel)
    if staged is None:
        # No lane-dense staging view exists (numel % 128 != 0).  Never emit a
        # single whole-array block (no pipelining, potential VMEM OOM) — a
        # contiguous view is free metadata anyway.
        return jnp.reshape(x, out_shape)

    rows, lanes = staged
    dtype_bytes = jnp.dtype(x.dtype).itemsize
    block_rows = _choose_block_rows(rows, lanes, dtype_bytes)

    # Reshape in the wrapper (free metadata) -> lane-dense 2-D staging view.
    x2 = jnp.reshape(x, (rows, lanes))
    grid = (pl.cdiv(rows, block_rows),)

    y2 = pl.pallas_call(
        _copy_kernel,
        out_shape=jax.ShapeDtypeStruct((rows, lanes), x.dtype),
        grid=grid,
        in_specs=[pl.BlockSpec((block_rows, lanes), lambda i: (i, 0))],
        out_specs=pl.BlockSpec((block_rows, lanes), lambda i: (i, 0)),
        compiler_params=pltpu.CompilerParams(
            # Purely independent tiles: shard across both TCs on v7x,
            # harmless on single-TC v5e/v6e.
            dimension_semantics=("parallel",),
        ),
        cost_estimate=pl.CostEstimate(
            flops=0,
            transcendentals=0,
            bytes_accessed=2 * numel * dtype_bytes,
        ),
    )(x2)

    # Final reshape to the user-requested shape is again free metadata.
    return jnp.reshape(y2, out_shape)


class View:
    """Mirror of the PyTorch module: View(size)(x) == x.view(size)."""

    def __init__(self, size):
        self.size = size

    def __call__(self, tensor, *, use_pallas=False):
        return view(tensor, self.size, use_pallas=use_pallas)


if __name__ == "__main__":
    key = jax.random.PRNGKey(0)

    # Case 1: small NCHW input flattened the way DeepIV's dsprite net uses
    # View: (N, C, H, W) -> (N, C*H*W).  Exercises the single-block path.
    x = jax.random.normal(key, (2, 4, 16, 16), dtype=jnp.float32)
    m = View((-1, 4 * 16 * 16))

    y_pallas = jax.block_until_ready(m(x, use_pallas=True))
    y_meta = jax.block_until_ready(m(x))            # default: free reshape
    ref = jnp.reshape(x, (2, 4 * 16 * 16))
    assert y_pallas.shape == (2, 1024) and y_pallas.dtype == x.dtype
    assert bool(jnp.array_equal(y_pallas, ref))
    assert bool(jnp.array_equal(y_meta, ref))

    # Case 2: slightly larger batch so the staging view splits into >=2
    # sublane-aligned tiles (multi-block / dual-TC path).
    x2 = jax.random.normal(jax.random.PRNGKey(1), (32, 4, 16, 16),
                           dtype=jnp.float32)
    y2 = jax.block_until_ready(view(x2, (-1, 4 * 16 * 16), use_pallas=True))
    ref2 = jnp.reshape(x2, (32, 1024))
    assert y2.shape == (32, 1024)
    assert bool(jnp.array_equal(y2, ref2))

    # Case 3: odd element count (not a multiple of 128) -> safe metadata-only
    # fallback instead of a degenerate whole-array block.
    x3 = jax.random.normal(jax.random.PRNGKey(2), (3, 5, 7), dtype=jnp.float32)
    y3 = jax.block_until_ready(view(x3, (-1,), use_pallas=True))
    assert bool(jnp.array_equal(y3, jnp.reshape(x3, (-1,))))

    print("KERNEL_OK")
</pallas_src>

<mosaic_0001>
module attributes {stable_mosaic.version = 11 : i64} {
  func.func @_copy_kernel(%arg0: i32, %arg1: memref<2x1024xf32, #tpu.memory_space<vmem>>, %arg2: memref<2x1024xf32, #tpu.memory_space<vmem>>) attributes {dimension_semantics = [#tpu.dimension_semantics<parallel>], iteration_bounds = array<i64: 1>, scalar_prefetch = 0 : i64, scratch_operands = 0 : i64, tpu.core_type = #tpu.core_type<tc>, window_params = [{transform_indices = @transform_0, window_bounds = array<i64: 2, 1024>}, {transform_indices = @transform_1, window_bounds = array<i64: 2, 1024>}]} {
    %c0 = arith.constant 0 : index
    %c0_0 = arith.constant 0 : index
    %0 = vector.load %arg1[%c0, %c0_0] : memref<2x1024xf32, #tpu.memory_space<vmem>>, vector<2x1024xf32>
    %c0_1 = arith.constant 0 : index
    %c0_2 = arith.constant 0 : index
    %1 = vector.load %arg2[%c0_1, %c0_2] : memref<2x1024xf32, #tpu.memory_space<vmem>>, vector<2x1024xf32>
    tpu.vector_store %arg2[%c0_1, %c0_2], %0 {strides = array<i32>} : memref<2x1024xf32, #tpu.memory_space<vmem>>, vector<2x1024xf32>,
    return
  }
  func.func @transform_0(%arg0: i32) -> (i32, i32) {
    %c0_i32 = arith.constant 0 : i32
    %c0_i32_0 = arith.constant 0 : i32
    return %arg0, %c0_i32 : i32, i32
  }
  func.func @transform_1(%arg0: i32) -> (i32, i32) {
    %c0_i32 = arith.constant 0 : i32
    %c0_i32_0 = arith.constant 0 : i32
    return %arg0, %c0_i32 : i32, i32
  }
}

</mosaic_0001>

<bundles_post_ra>
// kernel: tpu_custom_call.1
= control target key start
LH: loop header
LB: loop body
LE: loop exit
PB: predicated region body
PF: predicated region fallthrough
CT: control target
= control target key end

     0   :  { %6 = vsyncpa [#allocation3], 0  ;;  %s126_s0 = inlined_call_operand.hbm [shape: f32[2,1024], index: 0, kind: input, shape index: {}]   ;;  %s127_s1 = inlined_call_operand.hbm [shape: f32[2,1024], index: 1, kind: output, shape index: {}]  }
   0x1   :  { %7 = vsyncpa [#allocation4], 0  ;;  %s90_s6 = smov [#allocation2]   ;;  %s42_s10 = scalar_lea.hbm %s126_s0, 256 }
   0x2   :  { %s14_s7 = sshll.u32 %s90_s6, 4  ;;  %p43_p0 = scmp.ne.s32.totalorder %s126_s0, %s42_s10  ;;  %s15_s7 = int_to_ptr.vmem [resolvable:$true] %s14_s7 }
   0x3   :  { %p46_p1 = scmp.lt.u32.totalorder %s42_s10, %s126_s0 }
   0x5   :  { %p48_p2 = pnand %p46_p1, %p43_p0 }
   0x7   :  { %51 = shalt.err (!%p48_p2)
}
   0x8   :  { %s52_s15 = scalar_lea.vmem %s15_s7, 256  ;;  %p57_p4 = scmp.lt.s32.totalorder %s15_s7, %s15_s7 }
   0x9   :  { %p53_p3 = scmp.ne.s32.totalorder %s15_s7, %s52_s15  ;;  %p58_p5 = scmp.lt.s32.totalorder %s52_s15, %s52_s15 }
   0xb   :  { %p59_p6 = por %p58_p5, %p57_p4 }
   0xd   :  { %p60_p7 = pnand %p59_p6, %p53_p3 }
   0xf   :  { %63 = shalt.err (!%p60_p7)
}
  0x10   :  { %17 = dma.hbm_to_vmem [thread:$0]  %s126_s0, 256, %s15_s7, [#allocation3]  }
  0x11   :  { %86 = dma.done.wait [#allocation3], 256  }
  0x12   :  { %87 = vsyncadd [#allocation3], 4294967040  ;;  %s91_s18 = smov [#allocation5]   ;;  %v21_v0 = vld [vmem:[#allocation2] sm:$0xff]  ;;  %v22_v1 = vld [vmem:[#allocation2 + $0x8] sm:$0xff] }
  0x13   :  { %s31_s19 = sshll.u32 %s91_s18, 4  ;;  %23 = vst [vmem:[#allocation5] sm:$0xff] %v21_v0  ;;  %24 = vst [vmem:[#allocation5 + $0x8] sm:$0xff] %v22_v1  ;;  %s32_s19 = int_to_ptr.vmem [resolvable:$true] %s31_s19 }
  0x14   :  { %s64_s20 = scalar_lea.vmem %s32_s19, 256  ;;  %p69_p9 = scmp.lt.s32.totalorder %s32_s19, %s32_s19 }
  0x15   :  { %p65_p8 = scmp.ne.s32.totalorder %s32_s19, %s64_s20  ;;  %p70_p10 = scmp.lt.s32.totalorder %s64_s20, %s64_s20 }
  0x17   :  { %p71_p11 = por %p70_p10, %p69_p9 }
  0x19   :  { %p72_p12 = pnand %p71_p11, %p65_p8 }
  0x1b   :  { %75 = shalt.err (!%p72_p12)
}
  0x1c   :  { %s76_s0 = scalar_lea.hbm %s127_s1, 256 }
  0x1d   :  { %p77_p13 = scmp.ne.s32.totalorder %s127_s1, %s76_s0  ;;  %p80_p0 = scmp.lt.u32.totalorder %s76_s0, %s127_s1 }
  0x1f   :  { %p82_p1 = pnand %p80_p0, %p77_p13 }
  0x21   :  { %85 = shalt.err (!%p82_p1)
}
  0x22   :  { %34 = dma.vmem_to_hbm [thread:$0]  %s32_s19, 256, %s127_s1, [#allocation4]  }
  0x23   :  { %88 = dma.done.wait [#allocation4], 256  }
  0x24   :  { %89 = vsyncadd [#allocation4], 4294967040 }
  0x25   :  { %38 = vsyncpa [#allocation3], 1 }
  0x26   :  { %39 = vsyncpa [#allocation4], 1 }

</bundles_post_ra>
